<compile_context>
chip_gen: v7x
topology: tpu7x:2x2x1
jax: 0.10.0
libtpu: 0.0.40
codegen_flags: <defaults>
</compile_context>

<pallas_src>
import math

import jax
import jax.numpy as jnp
from jax.experimental import pallas as pl
from jax.experimental.pallas import tpu as pltpu

_LANE = 128                      # TPU lane width
_MAX_TB = 32768                  # max lanes per output block (multi-MiB blocks at emb_dim=16)
_VMEM_BLOCK_BUDGET = 12 << 20    # double-buffered in+out block budget (fits v5e's 16 MiB default)
_VMEM_LIMIT_BYTES = 32 << 20     # scoped-VMEM limit for Mosaic (<= physical on v5e/v6e/v7x)
_SPLIT_MIN_BYTES = 1 << 20       # min output bytes per block before splitting for v7x's 2 TCs
_PALLAS_MIN_BYTES = 256 << 10    # below this, standalone-kernel dispatch overhead dominates -> XLA


def _round_up(a, b):
    return pl.cdiv(a, b) * b


def _sinusoidal_kernel(freq_ref, phase_ref, x_ref, out_ref):
    """freq/phase: (out_dim, 1); x: (1, TB); out: (out_dim, TB).

    out[d, b] = sin(x[b] * freq[d] + phase[d])
      phase = 0        -> sin(x * f)
      phase = pi/2     -> cos(x * f)
      freq = phase = 0 -> 0          (odd-emb_dim zero pad column)
    One VPU mul/add chain + one sin pass + full-width (lane-dense) stores.
    The (1, TB) x-row / (out_dim, 1) table broadcast runs on the VPU; the
    kernel is DMA / per-step-overhead bound, so that broadcast is free slack
    (a stride-0 sublane-broadcast load would also work but buys nothing here).
    """
    arg = freq_ref[...] * x_ref[...] + phase_ref[...]        # (out_dim, TB) f32
    out_ref[...] = jnp.sin(arg).astype(out_ref.dtype)


def _freq_phase_tables(emb_dim, downscale_freq_shift, max_period, flip_sin_to_cos):
    """Trace-time constant tables, each shaped (emb_dim, 1)."""
    half = emb_dim // 2
    pad_odd = (emb_dim % 2 == 1)
    # NB: half == downscale_freq_shift raises ZeroDivisionError, exactly like
    # the PyTorch module (pure-Python division in both).
    scale = math.log(max_period) / (half - downscale_freq_shift)
    base = jnp.exp(-scale * jnp.arange(half, dtype=jnp.float32))      # (half,)
    freqs = jnp.concatenate([base, base])                             # (2*half,)
    quarter = jnp.full((half,), 0.5 * math.pi, dtype=jnp.float32)
    zeros_h = jnp.zeros((half,), dtype=jnp.float32)
    if flip_sin_to_cos:
        phase = jnp.concatenate([quarter, zeros_h])    # [cos-half, sin-half]
    else:
        phase = jnp.concatenate([zeros_h, quarter])    # [sin-half, cos-half]
    if pad_odd:
        zero1 = jnp.zeros((1,), dtype=jnp.float32)
        freqs = jnp.concatenate([freqs, zero1])
        phase = jnp.concatenate([phase, zero1])
    out_dim = 2 * half + (1 if pad_odd else 0)         # == emb_dim
    return freqs.reshape(out_dim, 1), phase.reshape(out_dim, 1)


def _sinusoidal_pos_emb_xla(x, emb_dim, downscale_freq_shift, max_period,
                            flip_sin_to_cos, out_dtype, transposed_output):
    """Plain-XLA path mirroring the PyTorch module (small-batch fallback)."""
    half = emb_dim // 2
    scale = math.log(max_period) / (half - downscale_freq_shift)
    f = jnp.exp(-scale * jnp.arange(half, dtype=jnp.float32))
    ang = x.astype(jnp.float32)[:, None] * f[None, :]
    emb = jnp.concatenate([jnp.sin(ang), jnp.cos(ang)], axis=-1)
    if flip_sin_to_cos:
        emb = jnp.concatenate([emb[:, half:], emb[:, :half]], axis=-1)
    if emb_dim % 2 == 1:
        emb = jnp.pad(emb, ((0, 0), (0, 1)))
    emb = emb.astype(out_dtype)
    return emb.T if transposed_output else emb


def sinusoidal_pos_emb(x, emb_dim=16, downscale_freq_shift=1, max_period=10000,
                       flip_sin_to_cos=False, out_dtype=jnp.float32,
                       transposed_output=False, backend="auto"):
    """Pallas TPU implementation of SinusoidalPosEmb.forward.

    x: (B,) array of timesteps.
    Returns (B, emb_dim) (PyTorch parity, incl. the zero pad column when
    emb_dim is odd), or (emb_dim, B) when transposed_output=True (lets the
    consumer fold the transpose and skip one full HBM pass).
    backend: "auto" (XLA for tiny batches), "pallas", or "xla".
    """
    x = jnp.asarray(x, jnp.float32)
    B = x.shape[0]
    out_dim = emb_dim
    itemsize = jnp.dtype(out_dtype).itemsize
    total_out_bytes = B * out_dim * itemsize

    if backend not in ("auto", "pallas", "xla"):
        raise ValueError(f"unknown backend {backend!r}")
    use_pallas = (backend == "pallas"
                  or (backend == "auto" and total_out_bytes >= _PALLAS_MIN_BYTES))
    if not use_pallas:
        # TODO(synk): in production, fuse this tiny op into the consumer
        # (timestep MLP) kernel's prologue instead of a standalone dispatch.
        return _sinusoidal_pos_emb_xla(x, emb_dim, downscale_freq_shift,
                                       max_period, flip_sin_to_cos,
                                       out_dtype, transposed_output)

    freqs_col, phase_col = _freq_phase_tables(emb_dim, downscale_freq_shift,
                                              max_period, flip_sin_to_cos)

    # --- batch tiling --------------------------------------------------------
    B_lane = _round_up(B, _LANE)
    # Cap TB so the double-buffered footprint (out_dim + 1 rows of f32 per lane,
    # two pipeline buffers) stays under the conservative cross-generation budget.
    tb_vmem_cap = _VMEM_BLOCK_BUDGET // (2 * 4 * (out_dim + 1))
    tb_cap = max(_LANE, (min(_MAX_TB, tb_vmem_cap) // _LANE) * _LANE)

    n_blocks = pl.cdiv(B_lane, tb_cap)
    # v7x megacore: when there is enough work, force an even grid of >= 2
    # blocks so both TensorCores get a share (no effect on v5e/v6e: 1 TC).
    total_lane_out_bytes = B_lane * out_dim * 4
    if total_lane_out_bytes >= 2 * _SPLIT_MIN_BYTES:
        if n_blocks == 1:
            n_blocks = 2
        elif (n_blocks % 2 == 1
              and total_lane_out_bytes // (n_blocks + 1) >= _SPLIT_MIN_BYTES):
            n_blocks += 1
    TB = _round_up(pl.cdiv(B_lane, n_blocks), _LANE)
    B_pad = n_blocks * TB

    x_row = (x if B_pad == B else jnp.pad(x, (0, B_pad - B))).reshape(1, B_pad)

    out_t = pl.pallas_call(
        _sinusoidal_kernel,
        out_shape=jax.ShapeDtypeStruct((out_dim, B_pad), out_dtype),
        grid=(n_blocks,),
        in_specs=[
            pl.BlockSpec((out_dim, 1), lambda i: (0, 0)),   # freqs (resident)
            pl.BlockSpec((out_dim, 1), lambda i: (0, 0)),   # phase (resident)
            pl.BlockSpec((1, TB), lambda i: (0, i)),        # timesteps
        ],
        out_specs=pl.BlockSpec((out_dim, TB), lambda i: (0, i)),
        compiler_params=pltpu.CompilerParams(
            dimension_semantics=("parallel",),
            vmem_limit_bytes=_VMEM_LIMIT_BYTES),
    )(freqs_col, phase_col, x_row)

    if B_pad != B:
        out_t = out_t[:, :B]            # drop batch padding
    if transposed_output:
        return out_t                    # (emb_dim, B): consumer folds the transpose
    # Module-parity layout; this transpose is the one remaining extra HBM pass.
    return out_t.T


def _reference(x, emb_dim=16, downscale_freq_shift=1, max_period=10000,
               flip_sin_to_cos=False):
    # Pure-JAX mirror of the PyTorch module.
    return _sinusoidal_pos_emb_xla(jnp.asarray(x, jnp.float32), emb_dim,
                                   downscale_freq_shift, max_period,
                                   flip_sin_to_cos, jnp.float32, False)


if __name__ == "__main__":
    k0, k1 = jax.random.split(jax.random.PRNGKey(0))
    B = 8
    # Diffusion timesteps: small positive floats.
    x = jax.random.uniform(k0, (B,), dtype=jnp.float32, minval=0.0, maxval=1000.0)

    # 1) Default config; force the Pallas path (auto would dispatch to XLA here).
    out = jax.block_until_ready(sinusoidal_pos_emb(x, emb_dim=16, backend="pallas"))
    ref = _reference(x, emb_dim=16)
    assert out.shape == (B, 16), out.shape
    err = float(jnp.max(jnp.abs(out - ref)))
    assert err < 1e-3, f"max abs err {err}"

    # 2) Odd emb_dim + flip_sin_to_cos, batch not a lane multiple.
    B2 = 300
    x2 = jax.random.uniform(k1, (B2,), dtype=jnp.float32, minval=0.0, maxval=1000.0)
    out2 = jax.block_until_ready(
        sinusoidal_pos_emb(x2, emb_dim=17, flip_sin_to_cos=True, backend="pallas"))
    ref2 = _reference(x2, emb_dim=17, flip_sin_to_cos=True)
    assert out2.shape == (B2, 17), out2.shape
    err2 = float(jnp.max(jnp.abs(out2 - ref2)))
    assert err2 < 1e-3, f"max abs err {err2}"

    # 3) Transposed bf16 output (consumer-fused layout; no wrapper transpose pass).
    out3 = jax.block_until_ready(
        sinusoidal_pos_emb(x, emb_dim=16, out_dtype=jnp.bfloat16,
                           transposed_output=True, backend="pallas"))
    assert out3.shape == (16, B) and out3.dtype == jnp.bfloat16, (out3.shape, out3.dtype)
    err3 = float(jnp.max(jnp.abs(out3.astype(jnp.float32).T - ref)))
    assert err3 < 1e-2, f"max abs err {err3}"

    # 4) Auto dispatch: tiny batch falls back to plain XLA with identical semantics.
    out4 = jax.block_until_ready(sinusoidal_pos_emb(x, emb_dim=16))
    err4 = float(jnp.max(jnp.abs(out4 - ref)))
    assert out4.shape == (B, 16) and err4 < 1e-5, f"max abs err {err4}"

    print("KERNEL_OK")
</pallas_src>

<mosaic_0001>
module attributes {stable_mosaic.version = 11 : i64} {
  func.func @_sinusoidal_kernel(%arg0: i32, %arg1: memref<16x1xf32, #tpu.memory_space<vmem>>, %arg2: memref<16x1xf32, #tpu.memory_space<vmem>>, %arg3: memref<1x128xf32, #tpu.memory_space<vmem>>, %arg4: memref<16x128xf32, #tpu.memory_space<vmem>>) attributes {dimension_semantics = [#tpu.dimension_semantics<parallel>], iteration_bounds = array<i64: 1>, scalar_prefetch = 0 : i64, scratch_operands = 0 : i64, tpu.core_type = #tpu.core_type<tc>, window_params = [{pipeline_mode = #tpu.pipeline_mode<synchronous>, transform_indices = @transform_0, window_bounds = array<i64: 16, 1>}, {pipeline_mode = #tpu.pipeline_mode<synchronous>, transform_indices = @transform_1, window_bounds = array<i64: 16, 1>}, {transform_indices = @transform_2, window_bounds = array<i64: 1, 128>}, {transform_indices = @transform_3, window_bounds = array<i64: 16, 128>}]} {
    %c0 = arith.constant 0 : index
    %c0_0 = arith.constant 0 : index
    %0 = vector.load %arg1[%c0, %c0_0] : memref<16x1xf32, #tpu.memory_space<vmem>>, vector<16x1xf32>
    %c0_1 = arith.constant 0 : index
    %c0_2 = arith.constant 0 : index
    %1 = vector.load %arg3[%c0_1, %c0_2] : memref<1x128xf32, #tpu.memory_space<vmem>>, vector<1x128xf32>
    %2 = vector.broadcast %0 : vector<16x1xf32> to vector<16x128xf32>
    %3 = vector.broadcast %1 : vector<1x128xf32> to vector<16x128xf32>
    %4 = arith.mulf %2, %3 : vector<16x128xf32>
    %c0_3 = arith.constant 0 : index
    %c0_4 = arith.constant 0 : index
    %5 = vector.load %arg2[%c0_3, %c0_4] : memref<16x1xf32, #tpu.memory_space<vmem>>, vector<16x1xf32>
    %6 = vector.broadcast %5 : vector<16x1xf32> to vector<16x128xf32>
    %7 = arith.addf %4, %6 : vector<16x128xf32>
    %8 = math.sin %7 : vector<16x128xf32>
    %c0_5 = arith.constant 0 : index
    %c0_6 = arith.constant 0 : index
    %9 = vector.load %arg4[%c0_5, %c0_6] : memref<16x128xf32, #tpu.memory_space<vmem>>, vector<16x128xf32>
    tpu.vector_store %arg4[%c0_5, %c0_6], %8 {strides = array<i32>} : memref<16x128xf32, #tpu.memory_space<vmem>>, vector<16x128xf32>,
    return
  }
  func.func @transform_0(%arg0: i32) -> (i32, i32) {
    %c0_i32 = arith.constant 0 : i32
    %c0_i32_0 = arith.constant 0 : i32
    %c0_i32_1 = arith.constant 0 : i32
    return %c0_i32, %c0_i32_0 : i32, i32
  }
  func.func @transform_1(%arg0: i32) -> (i32, i32) {
    %c0_i32 = arith.constant 0 : i32
    %c0_i32_0 = arith.constant 0 : i32
    %c0_i32_1 = arith.constant 0 : i32
    return %c0_i32, %c0_i32_0 : i32, i32
  }
  func.func @transform_2(%arg0: i32) -> (i32, i32) {
    %c0_i32 = arith.constant 0 : i32
    %c0_i32_0 = arith.constant 0 : i32
    return %c0_i32, %arg0 : i32, i32
  }
  func.func @transform_3(%arg0: i32) -> (i32, i32) {
    %c0_i32 = arith.constant 0 : i32
    %c0_i32_0 = arith.constant 0 : i32
    return %c0_i32, %arg0 : i32, i32
  }
}

</mosaic_0001>

<bundles_post_ra>
// kernel: tpu_custom_call.1
= control target key start
LH: loop header
LB: loop body
LE: loop exit
PB: predicated region body
PF: predicated region fallthrough
CT: control target
= control target key end

     0   :  { %v337_v2 = vmov 0   ;;  %s462_s0 = inlined_call_operand.vmem [shape: f32[16,1], index: 0, kind: input, shape index: {}]   ;;  %s463_s1 = inlined_call_operand.vmem [shape: f32[16,1], index: 1, kind: input, shape index: {}]   ;;  %s464_s2 = inlined_call_operand.vmem [shape: f32[1,128], index: 2, kind: input, shape index: {}]   ;;  %s465_s3 = inlined_call_operand.hbm [shape: f32[16,128], index: 3, kind: output, shape index: {}]  }
   0x1   :  { %v36_v0 = vld [vmem:[%s463_s1] sm:$0xff]  ;;  %304 = vset.pattern.permute.xlu1 %v337_v2  ;;  %303 = vset.pattern.permute.xlu0 %v337_v2  ;;  %v37_v3 = vld [vmem:[%s463_s1 + $0x8] sm:$0xff] }
   0x2   :  { %v15_v1 = vld [vmem:[%s462_s0] sm:$0xff]  ;;  %40 = vperm.xlu1 %304, %v36_v0   ;;  %v16_v4 = vld [vmem:[%s462_s0 + $0x8] sm:$0xff] }
   0x3   :  { %20 = vperm.xlu0 %303, %v15_v1  }
   0x4   :  { %8 = vsyncpa [#allocation3], 0  ;;  %v276_v5 = vld [vmem:[%s464_s2] ss:$0 sm:$0xff]  ;;  %v338_v30 = vmov 683565275  }
   0x5   :  { %v339_v34 = vmov 2475754826   ;;  %v340_v36 = vmov 2131351028   ;;  %v341_v38 = vmov 2102212464  }
   0x6   :  { %45 = vperm.xlu1 %304, %v37_v3   ;;  %v342_v40 = vmov 920167782   ;;  %v343_v47 = vmov 1326507024   ;;  %s344_s0 = smov [#allocation2]  }
   0x7   :  { %25 = vperm.xlu0 %303, %v16_v4   ;;  %s265_s1 = sshll.u32 %s344_s0, 4  ;;  %s266_s1 = int_to_ptr.vmem [resolvable:$true] %s265_s1 }
   0x8   :  { %s313_s2 = scalar_lea.vmem %s266_s1, 256  ;;  %p318_p1 = scmp.lt.s32.totalorder %s266_s1, %s266_s1 }
   0x9   :  { %p314_p0 = scmp.ne.s32.totalorder %s266_s1, %s313_s2  ;;  %p319_p2 = scmp.lt.s32.totalorder %s313_s2, %s313_s2 }
   0xb   :  { %p320_p3 = por %p319_p2, %p318_p1 }
   0xd   :  { %p321_p4 = pnand %p320_p3, %p314_p0 }
  0x81   :  { %v41_v6 = vpop.permute.xlu1 %40 }
  0x82   :  { %v21_v7 = vpop.permute.xlu0 %20 }
  0x83   :  { %v34_v8 = vmul.f32 %v276_v5, %v21_v7 }
  0x85   :  { %v382_v9 = vadd.f32 %v41_v6, %v34_v8  ;;  %v46_v14 = vpop.permute.xlu1 %45 }
  0x86   :  { %v26_v10 = vpop.permute.xlu0 %25 }
  0x87   :  { %v50_v11 = vand.u32 2147483647, %v382_v9  ;;  %v53_v12 = vand.u32 2139095040, %v382_v9  ;;  %v35_v13 = vmul.f32 %v276_v5, %v26_v10  ;;  %vm52_vm14 = vcmp.lt.s32.totalorder %v382_v9, 0 }
  0x89   :  { %v54_v15 = vshrl.u32 %v53_v12, 23  ;;  %v386_v16 = vadd.f32 %v46_v14, %v35_v13  ;;  %v57_v17 = vand.u32 8388607, %v50_v11  ;;  %vm51_vm15 = vcmp.le.f32.partialorder %v50_v11, 0.7853982 }
  0x8b   :  { %v277_v18 = vadd.s32 4294967169, %v54_v15  ;;  %v157_v19 = vand.u32 2139095040, %v386_v16  ;;  %v58_v21 = vor.u32 8388608, %v57_v17  ;;  %v154_v23 = vand.u32 2147483647, %v386_v16 }
  0x8d   :  { %v60_v20 = vadd.s32 1, %v277_v18  ;;  %v158_v22 = vshrl.u32 %v157_v19, 23  ;;  %v392_v28 = vshll.u32 %v58_v21, 8  ;;  %v161_v32 = vand.u32 8388607, %v154_v23 }
  0x8f   :  { %vm61_vm0 = vcmp.gt.s32.totalorder %v60_v20, 0  ;;  %v281_v25 = vadd.s32 4294967169, %v158_v22  ;;  %v162_v62 = vor.u32 8388608, %v161_v32 }
  0x90   :  { %v62_v24 = vsel %vm61_vm0, %v60_v20, 0  ;;  %vm156_vm0 = vcmp.lt.s32.totalorder %v386_v16, 0 }
  0x91   :  { %v63_v26 = vshrl.u32 %v62_v24, 5  ;;  %v64_v27 = vand.u32 31, %v62_v24  ;;  %v164_v33 = vadd.s32 1, %v281_v25  ;;  %v202_v13 = vshll.u32 %v162_v62, 8 }
  0x93   :  { %v65_v29 = vsub.s32 32, %v64_v27  ;;  %v67_v31 = vshll.u32 %v338_v30, %v64_v27  ;;  %v70_v35 = vshll.u32 %v339_v34, %v64_v27  ;;  %v73_v37 = vshll.u32 %v340_v36, %v64_v27 }
  0x94   :  { %v76_v39 = vshll.u32 %v341_v38, %v64_v27  ;;  %v79_v41 = vshll.u32 %v342_v40, %v64_v27  ;;  %vm82_vm1 = vcmp.lt.s32.totalorder %v63_v26, 1  ;;  %vm84_vm2 = vcmp.lt.s32.totalorder %v63_v26, 3 }
  0x95   :  { %v68_v42 = vshrl.u32 %v339_v34, %v65_v29  ;;  %v71_v43 = vshrl.u32 %v340_v36, %v65_v29  ;;  %v74_v44 = vshrl.u32 %v341_v38, %v65_v29  ;;  %v66_v45 = vshrl.u32 %v338_v30, %v65_v29 }
  0x96   :  { %v77_v46 = vshrl.u32 %v342_v40, %v65_v29  ;;  %v80_v48 = vshrl.u32 %v343_v47, %v65_v29  ;;  %vm165_vm3 = vcmp.gt.s32.totalorder %v164_v33, 0  ;;  %vm85_vm4 = vcmp.lt.s32.totalorder %v63_v26, 4 }
  0x97   :  { %v69_v49 = vor.u32 %v68_v42, %v67_v31  ;;  %v72_v50 = vor.u32 %v71_v43, %v70_v35  ;;  %v75_v51 = vor.u32 %v74_v44, %v73_v37  ;;  %v166_v54 = vsel %vm165_vm3, %v164_v33, 0 }
  0x98   :  { %v78_v52 = vor.u32 %v77_v46, %v76_v39  ;;  %v81_v53 = vor.u32 %v80_v48, %v79_v41  ;;  %vm83_vm5 = vcmp.lt.s32.totalorder %v63_v26, 2  ;;  %v168_v1 = vand.u32 31, %v166_v54 }
  0x99   :  { %v86_v55 = vsel %vm82_vm1, %v66_v45, %v69_v49  ;;  %v87_v56 = vsel %vm85_vm4, %v75_v51, 2102212464  ;;  %v90_v57 = vsel %vm82_vm1, %v69_v49, %v72_v50  ;;  %v94_v58 = vsel %vm82_vm1, %v72_v50, %v75_v51 }
  0x9a   :  { %v88_v59 = vsel %vm84_vm2, %v72_v50, %v87_v56  ;;  %v91_v60 = vsel %vm85_vm4, %v78_v52, 920167782  ;;  %v95_v61 = vsel %vm85_vm4, %v81_v53, 1326507024  ;;  %v167_v10 = vshrl.u32 %v166_v54, 5 }
  0x9b   :  { %v92_v63 = vsel %vm84_vm2, %v75_v51, %v91_v60  ;;  %v96_v0 = vsel %vm84_vm2, %v78_v52, %v95_v61  ;;  %v89_v2 = vsel %vm83_vm5, %v86_v55, %v88_v59  ;;  %v169_v12 = vsub.s32 32, %v168_v1 }
  0x9c   :  { %v93_v3 = vsel %vm83_vm5, %v90_v57, %v92_v63  ;;  %v97_v4 = vsel %vm83_vm5, %v94_v58, %v96_v0  ;;  %v105_v14 = vmul.u32 %v392_v28, %v89_v2  ;;  %v171_v15 = vshll.u32 %v338_v30, %v168_v1 }
  0x9d   :  { %v405_v5 = vmul.u32.u64.low %v392_v28, %v97_v4  ;;  %v406_v6 = vmul.u32.u64.high %v392_v28, %v97_v4, %v405_v5  ;;  %v409_v7 = vmul.u32.u64.low %v392_v28, %v93_v3  ;;  %v410_v8 = vmul.u32.u64.high %v392_v28, %v93_v3, %v409_v7 }
  0x9e   :  { %v174_v17 = vshll.u32 %v339_v34, %v168_v1  ;;  %v177_v18 = vshll.u32 %v340_v36, %v168_v1  ;;  %v172_v19 = vshrl.u32 %v339_v34, %v169_v12  ;;  %v175_v20 = vshrl.u32 %v340_v36, %v169_v12 }
  0x9f   :  { %v178_v21 = vshrl.u32 %v341_v38, %v169_v12  ;;  %v180_v22 = vshll.u32 %v341_v38, %v168_v1  ;;  %vm107_vm6 = vc.u32 %v406_v6, %v409_v7  ;;  %v108_v24 = vadd.s32 1, %v410_v8 }
  0xa0   :  { %v181_v25 = vshrl.u32 %v342_v40, %v169_v12  ;;  %v183_v26 = vshll.u32 %v342_v40, %v168_v1  ;;  %v173_v27 = vor.u32 %v172_v19, %v171_v15  ;;  %v176_v29 = vor.u32 %v175_v20, %v174_v17 }
  0xa1   :  { %v179_v31 = vor.u32 %v178_v21, %v177_v18  ;;  %v184_v32 = vshrl.u32 %v343_v47, %v169_v12  ;;  %v109_v28 = vsel %vm107_vm6, %v108_v24, %v410_v8  ;;  %vm186_vm7 = vcmp.lt.s32.totalorder %v167_v10, 1 }
  0xa2   :  { %v182_v33 = vor.u32 %v181_v25, %v180_v22  ;;  %vm189_vm8 = vcmp.lt.s32.totalorder %v167_v10, 4  ;;  %v110_v34 = vadd.s32 %v109_v28, %v105_v14  ;;  %vm188_vm9 = vcmp.lt.s32.totalorder %v167_v10, 3 }
  0xa3   :  { %v185_v35 = vor.u32 %v184_v32, %v183_v26  ;;  %v191_v36 = vsel %vm189_vm8, %v179_v31, 2102212464  ;;  %v170_v37 = vshrl.u32 %v338_v30, %v169_v12  ;;  %v194_v38 = vsel %vm186_vm7, %v173_v27, %v176_v29 }
  0xa4   :  { %v195_v39 = vsel %vm189_vm8, %v182_v33, 920167782  ;;  %v198_v41 = vsel %vm186_vm7, %v176_v29, %v179_v31  ;;  %v111_v42 = vadd.s32 536870912, %v110_v34  ;;  %vm187_vm10 = vcmp.lt.s32.totalorder %v167_v10, 2 }
  0xa5   :  { %v196_v40 = vsel %vm188_vm9, %v179_v31, %v195_v39  ;;  %v199_v43 = vsel %vm189_vm8, %v185_v35, 1326507024  ;;  %v190_v44 = vsel %vm186_vm7, %v170_v37, %v173_v27  ;;  %v192_v45 = vsel %vm188_vm9, %v176_v29, %v191_v36 }
  0xa6   :  { %v197_v46 = vsel %vm187_vm10, %v194_v38, %v196_v40  ;;  %v200_v47 = vsel %vm188_vm9, %v182_v33, %v199_v43  ;;  %v112_v48 = vshrl.u32 %v111_v42, 30  ;;  %v193_v54 = vsel %vm187_vm10, %v190_v44, %v192_v45 }
  0xa7   :  { %v201_v49 = vsel %vm187_vm10, %v198_v41, %v200_v47  ;;  %v420_v50 = vmul.u32.u64.low %v202_v13, %v197_v46  ;;  %v421_v51 = vmul.u32.u64.high %v202_v13, %v197_v46, %v420_v50  ;;  %v209_v57 = vmul.u32 %v202_v13, %v193_v54 }
  0xa8   :  { %v423_v52 = vmul.u32.u64.low %v202_v13, %v201_v49  ;;  %v424_v53 = vmul.u32.u64.high %v202_v13, %v201_v49, %v423_v52  ;;  %v113_v30 = vshll.u32 %v112_v48, 30  ;;  %v106_v5 = vadd.s32 %v409_v7, %v406_v6 }
  0xa9   :  { %v212_v56 = vadd.s32 1, %v421_v51  ;;  %v136_v27 = vsub.s32 4, %v112_v48  ;;  %vm439_vm1 = vcmp.le.f32.partialorder %v154_v23, 0.7853982  ;;  %vm142_vm5 = vweird.f32 %v382_v9 }
  0xaa   :  { %v114_v55 = vsub.s32 %v110_v34, %v113_v30  ;;  %vm211_vm11 = vc.u32 %v424_v53, %v420_v50  ;;  %v210_v6 = vadd.s32 %v420_v50, %v424_v53  ;;  %vm246_vm9 = vweird.f32 %v386_v16 }
  0xab   :  { %v213_v59 = vsel %vm211_vm11, %v212_v56, %v421_v51  ;;  %v137_v36 = vsel %vm52_vm14, %v136_v27, %v112_v48 }
  0xac   :  { %v116_v58 = vsub.s32 0, %v114_v55  ;;  %v214_v60 = vadd.s32 %v213_v59, %v209_v57  ;;  %v139_v42 = vsel %vm51_vm15, 0, %v137_v36 }
  0xad   :  { %v143_v44 = vadd.s32 3, %v139_v42 }
  0xae   :  { %v278_v61 = vmin.u32 %v116_v58, %v114_v55  ;;  %v215_v62 = vadd.s32 536870912, %v214_v60 }
  0xaf   :  { %v144_v49 = vand.u32 3, %v143_v44 }
  0xb0   :  { %v118_v63 = vclz %v278_v61  ;;  %v216_v0 = vshrl.u32 %v215_v62, 30 }
  0xb1   :  { %vm149_vm2 = vcmp.eq.s32.totalorder %v144_v49, 2  ;;  %vm146_vm3 = vcmp.eq.s32.totalorder %v144_v49, 0  ;;  %vm145_vm4 = vcmp.lt.s32.totalorder %v144_v49, 2 }
  0xb2   :  { %v279_v1 = vadd.s32 4294967294, %v118_v63  ;;  %v217_v2 = vshll.u32 %v216_v0, 30  ;;  %v240_v46 = vsub.s32 4, %v216_v0 }
  0xb4   :  { %vm280_vm12 = vcmp.lt.s32.totalorder %v279_v1, 0  ;;  %v218_v4 = vsub.s32 %v214_v60, %v217_v2  ;;  %v241_v50 = vsel %vm156_vm0, %v240_v46, %v216_v0 }
  0xb5   :  { %v121_v3 = vsel %vm280_vm12, 0, %v279_v1 }
  0xb6   :  { %v122_v8 = vsub.s32 32, %v121_v3  ;;  %v126_v10 = vsub.s32 4294967266, %v121_v3  ;;  %v220_v12 = vsub.s32 0, %v218_v4  ;;  %v123_v13 = vshll.u32 %v114_v55, %v121_v3 }
  0xb7   :  { %v243_v55 = vsel %vm439_vm1, 0, %v241_v50 }
  0xb8   :  { %v124_v14 = vshrl.u32 %v106_v5, %v122_v8  ;;  %v127_v15 = vadd.s32 127, %v126_v10  ;;  %v282_v17 = vmin.u32 %v220_v12, %v218_v4  ;;  %v247_v58 = vadd.s32 3, %v243_v55 }
  0xba   :  { %v125_v18 = vor.u32 %v124_v14, %v123_v13  ;;  %v128_v19 = vshll.u32 %v127_v15, 23  ;;  %v222_v20 = vclz %v282_v17  ;;  %v248_v60 = vand.u32 3, %v247_v58 }
  0xbc   :  { %v129_v21 = vor.u32 4788187, %v128_v19  ;;  %v283_v22 = vadd.s32 4294967294, %v222_v20  ;;  %v132_v25 = vcvt.s32.f32 %v125_v18  ;;  %vm253_vm6 = vcmp.eq.s32.totalorder %v248_v60, 2 }
  0xbd   :  { %vm250_vm7 = vcmp.eq.s32.totalorder %v248_v60, 0  ;;  %vm249_vm8 = vcmp.lt.s32.totalorder %v248_v60, 2 }
  0xbe   :  { %v130_v24 = vand.u32 2147483647, %v129_v21  ;;  %vm284_vm13 = vcmp.lt.s32.totalorder %v283_v22, 0 }
  0xbf   :  { %v225_v29 = vsel %vm284_vm13, 0, %v283_v22 }
  0xc0   :  { %v133_v26 = vmul.f32 %v132_v25, %v130_v24  ;;  %v226_v7 = vsub.s32 32, %v225_v29  ;;  %v230_v31 = vsub.s32 4294967266, %v225_v29  ;;  %v227_v28 = vshll.u32 %v218_v4, %v225_v29 }
  0xc2   :  { %v134_v32 = vxor.u32 2147483648, %v133_v26  ;;  %v228_v33 = vshrl.u32 %v210_v6, %v226_v7  ;;  %v231_v34 = vadd.s32 127, %v230_v31 }
  0xc4   :  { %v135_v35 = vsel %vm52_vm14, %v134_v32, %v133_v26  ;;  %v229_v38 = vor.u32 %v228_v33, %v227_v28  ;;  %v232_v39 = vshll.u32 %v231_v34, 23 }
  0xc5   :  { %v138_v37 = vsel %vm51_vm15, %v382_v9, %v135_v35 }
  0xc6   :  { %305 = vcosq.f32 %v138_v37  ;;  %v233_v41 = vor.u32 4788187, %v232_v39  ;;  %v236_v43 = vcvt.s32.f32 %v229_v38 }
  0xc7   :  { %307 = vsinq.f32 %v138_v37 }
  0xc8   :  { %v234_v40 = vand.u32 2147483647, %v233_v41 }
  0xca   :  { %v237_v45 = vmul.f32 %v236_v43, %v234_v40 }
  0xcc   :  { %v238_v47 = vxor.u32 2147483648, %v237_v45 }
  0xce   :  { %v239_v48 = vsel %vm156_vm0, %v238_v47, %v237_v45 }
  0xcf   :  { %v242_v52 = vsel %vm439_vm1, %v386_v16, %v239_v48 }
  0xd0   :  { %v306_v51 = vpop.eup %305  ;;  %309 = vcosq.f32 %v242_v52 }
  0xd1   :  { %v308_v53 = vpop.eup %307  ;;  %v150_v30 = vxor.u32 2147483648, %v306_v51  ;;  %311 = vsinq.f32 %v242_v52 }
  0xd2   :  { %v147_v54 = vxor.u32 2147483648, %v308_v53 }
  0xd3   :  { %v151_v23 = vsel %vm149_vm2, %v150_v30, %v308_v53 }
  0xd4   :  { %v148_v56 = vsel %vm146_vm3, %v306_v51, %v147_v54 }
  0xd5   :  { %v152_v57 = vsel %vm145_vm4, %v148_v56, %v151_v23 }
  0xd6   :  { %v153_v59 = vsel %vm142_vm5, nan, %v152_v57 }
  0xd7   :  { %258 = vst [vmem:[#allocation2] sm:$0xff] %v153_v59 }
  0xda   :  { %v310_v61 = vpop.eup %309 }
  0xdb   :  { %v312_v62 = vpop.eup %311  ;;  %v254_v63 = vxor.u32 2147483648, %v310_v61 }
  0xdc   :  { %v251_v0 = vxor.u32 2147483648, %v312_v62 }
  0xdd   :  { %v255_v1 = vsel %vm253_vm6, %v254_v63, %v312_v62 }
  0xde   :  { %v252_v2 = vsel %vm250_vm7, %v310_v61, %v251_v0 }
  0xdf   :  { %v256_v3 = vsel %vm249_vm8, %v252_v2, %v255_v1 }
  0xe0   :  { %v257_v9 = vsel %vm246_vm9, nan, %v256_v3 }
  0xe1   :  { %259 = vst [vmem:[#allocation2 + $0x8] sm:$0xff] %v257_v9 }
  0xe2   :  { %324 = shalt.err (!%p321_p4)
}
  0xe3   :  { %s325_s24 = scalar_lea.hbm %s465_s3, 256 }
  0xe4   :  { %p326_p5 = scmp.ne.s32.totalorder %s465_s3, %s325_s24  ;;  %p329_p6 = scmp.lt.u32.totalorder %s325_s24, %s465_s3 }
  0xe6   :  { %p331_p7 = pnand %p329_p6, %p326_p5 }
  0xe8   :  { %334 = shalt.err (!%p331_p7)
}
  0xe9   :  { %s345_s29 = smov 128   ;;  %s346_s30 = smov 8  }
  0xea   :  { %271 = dma.vmem_to_hbm [thread:$0]  %s266_s1, 256, %s465_s3, [#allocation3], %s345_s29, %s345_s29, %s346_s30  }
  0xeb   :  { %335 = dma.done.wait [#allocation3], 256  }
  0xec   :  { %336 = vsyncadd [#allocation3], 4294967040 }
  0xed   :  { %275 = vsyncpa [#allocation3], 1 }

</bundles_post_ra>
